<compile_context>
chip_gen: v5e
topology: v5e:2x2
jax: 0.10.0
libtpu: 0.0.40
codegen_flags: <defaults>
</compile_context>

<pallas_src>
import functools
import math

import jax
import jax.numpy as jnp
from jax import lax
from jax.experimental import pallas as pl
from jax.experimental.pallas import tpu as pltpu


def _round_up(n, m):
    return ((n + m - 1) // m) * m


def _mlp_attn_kernel(x_ref, tf_ref, slab_ref, out_ref, *, e, dh, s, out_w):
    """Fully folded 1-head attention + heads: 4 tiny matmuls, one unmasked store."""
    x = x_ref[...].astype(jnp.float32)    # (1, E)   (astype is a no-op for f32 inputs)
    tf = tf_ref[...].astype(jnp.float32)  # (S, E)

    # Static Ref-level slices of the packed weight slab (views; no value-level lane splits).
    w_qk = slab_ref[0:e, 0:e]             # (E, E)  = scale * Wq^T @ Wk
    b_qk = slab_ref[e:e + 1, 0:e]         # (1, E)  = scale * bq @ Wk
    w_vh = slab_ref[0:e, e:e + dh]        # (E, dh) = Wv^T @ Wo^T @ [W1^T | W2^T]
    b_vh = slab_ref[e:e + 1, e:e + dh]    # (1, dh)

    # scores (up to a softmax-invariant constant) = q_scaled @ k^T
    qk = jnp.dot(x, w_qk, preferred_element_type=jnp.float32) + b_qk          # (1, E)
    scores = lax.dot_general(qk, tf, dimension_numbers=(((1,), (1,)), ((), ())),
                             preferred_element_type=jnp.float32)              # (1, S)

    m = jnp.max(scores, axis=-1, keepdims=True)
    p = jnp.exp(scores - m)
    denom = jnp.sum(p, axis=-1, keepdims=True)
    attn = p * pl.reciprocal(denom, approx=False)                             # (1, S)

    # h/out-proj/heads all folded into w_vh / b_vh (uses sum(attn) == 1)
    ctx = jnp.dot(attn, tf, preferred_element_type=jnp.float32)               # (1, E)
    z = jnp.dot(ctx, w_vh, preferred_element_type=jnp.float32) + b_vh         # (1, dh)

    # single lane-dense unmasked store: [sigmoid(z1|z2) | attn | zero pad]
    pad = out_w - (dh + s)
    out_ref[...] = jnp.concatenate(
        [jax.nn.sigmoid(z), attn, jnp.zeros((1, pad), jnp.float32)], axis=-1)


def _full_spec(shape):
    # whole array as a single VMEM block (shapes here are tiny)
    return pl.BlockSpec(shape, lambda: tuple(0 for _ in shape))


def pack_params(params):
    """One-time host-side packing of PyTorch-layout weights into ONE lane-dense f32 slab.

    Layout (rows x 128-lane columns), E = in_dim, dh = out_dim1 + out_dim2:
      rows 0..E-1 , lanes 0..E-1      : W_qk  = (1/sqrt(E)) * Wq^T @ Wk
      rows 0..E-1 , lanes E..E+dh-1   : W_vh  = Wv^T @ Wo^T @ [W1^T | W2^T]
      row  E      , lanes 0..E-1      : b_qk  = (1/sqrt(E)) * bq @ Wk
      row  E      , lanes E..E+dh-1   : b_vh  = (bv @ Wo^T + bo) @ [W1^T|W2^T] + [b1|b2]
      remaining rows / lanes          : zero padding (sublane mult-of-8, lane mult-of-128)
    """
    f32 = lambda a: jnp.asarray(a, jnp.float32)
    wq, bq = f32(params["wq"]), f32(params["bq"])
    wk = f32(params["wk"])
    wv, bv = f32(params["wv"]), f32(params["bv"])
    wo, bo = f32(params["wo"]), f32(params["bo"])
    w1, b1 = f32(params["w1"]), f32(params["b1"])
    w2, b2 = f32(params["w2"]), f32(params["b2"])

    e = wq.shape[0]
    dh = w1.shape[0] + w2.shape[0]
    scale = jnp.float32(1.0 / math.sqrt(e))

    # Query/key fold. The key bias contributes the same constant to every score
    # (q_scaled . bk), which softmax ignores, so it is dropped exactly.
    w_qkf = (wq.T @ wk) * scale                                  # (E, E)
    b_qkf = (bq @ wk) * scale                                    # (E,)

    # Value + out-proj + heads fold (value bias uses sum(attn) == 1).
    w_heads = jnp.concatenate([w1.T, w2.T], axis=1)              # (E, dh)
    w_vh = wv.T @ wo.T @ w_heads                                 # (E, dh)
    b_vh = (bv @ wo.T + bo) @ w_heads + jnp.concatenate([b1, b2])  # (dh,)

    rows = _round_up(e + 1, 8)
    cols = _round_up(e + dh, 128)
    slab = jnp.zeros((rows, cols), jnp.float32)
    slab = slab.at[0:e, 0:e].set(w_qkf)
    slab = slab.at[0:e, e:e + dh].set(w_vh)
    slab = slab.at[e, 0:e].set(b_qkf)
    slab = slab.at[e, e:e + dh].set(b_vh)
    return slab


@functools.partial(jax.jit, static_argnames=("out_dim1", "out_dim2"))
def mlp_forward(x, task_feats, slab, *, out_dim1, out_dim2):
    """x: (in_dim,) f32 ; task_feats: (S, in_dim) f32 ; slab from pack_params()."""
    e = x.shape[-1]
    s = task_feats.shape[0]
    dh = out_dim1 + out_dim2
    out_w = _round_up(dh + s, 128)          # lane-dense single output row

    x2d = x.reshape(1, e)                   # metadata-only; no per-call astype
    args = (x2d, task_feats, slab)

    kernel = functools.partial(_mlp_attn_kernel, e=e, dh=dh, s=s, out_w=out_w)
    out = pl.pallas_call(
        kernel,
        out_shape=jax.ShapeDtypeStruct((1, out_w), jnp.float32),
        grid=(),
        in_specs=[_full_spec(a.shape) for a in args],
        out_specs=_full_spec((1, out_w)),
        compiler_params=pltpu.CompilerParams(),
    )(*args)

    # match torch return: x1 (out_dim1,), x2 (out_dim2,), w (1, S)
    x1 = out[0, :out_dim1]
    x2 = out[0, out_dim1:dh]
    w = out[:, dh:dh + s]
    return x1, x2, w


def _pure_jax_reference(x, task_feats, params):
    E = x.shape[-1]
    xq = x.reshape(1, E)
    q = xq @ params["wq"].T + params["bq"]
    k = task_feats @ params["wk"].T + params["bk"]
    v = task_feats @ params["wv"].T + params["bv"]
    scores = (q / jnp.sqrt(jnp.float32(E))) @ k.T
    attn = jax.nn.softmax(scores, axis=-1)
    h = attn @ v
    h = h @ params["wo"].T + params["bo"]
    x1 = jax.nn.sigmoid(h @ params["w1"].T + params["b1"]).reshape(-1)
    x2 = jax.nn.sigmoid(h @ params["w2"].T + params["b2"]).reshape(-1)
    return x1, x2, attn


if __name__ == "__main__":
    # small shapes consistent with the module
    in_dim, out_dim1, out_dim2 = 32, 16, 8
    num_tasks = 8

    key = jax.random.PRNGKey(0)
    ks = jax.random.split(key, 16)

    def init(k, shape, scale=0.1):
        return scale * jax.random.normal(k, shape, dtype=jnp.float32)

    params = {
        # nn.MultiheadAttention(in_dim, 1): in_proj (3E, E) split into q/k/v, out_proj (E, E)
        "wq": init(ks[0], (in_dim, in_dim)), "bq": init(ks[1], (in_dim,)),
        "wk": init(ks[2], (in_dim, in_dim)), "bk": init(ks[3], (in_dim,)),
        "wv": init(ks[4], (in_dim, in_dim)), "bv": init(ks[5], (in_dim,)),
        "wo": init(ks[6], (in_dim, in_dim)), "bo": init(ks[7], (in_dim,)),
        # transform1: Linear(in_dim, out_dim1); transform2: Linear(in_dim, out_dim2)
        "w1": init(ks[8], (out_dim1, in_dim)), "b1": init(ks[9], (out_dim1,)),
        "w2": init(ks[10], (out_dim2, in_dim)), "b2": init(ks[11], (out_dim2,)),
    }

    x = jax.random.normal(ks[12], (in_dim,), dtype=jnp.float32)
    task_feats = jax.random.normal(ks[13], (num_tasks, in_dim), dtype=jnp.float32)

    # one-time packing (folds q/k, v/out-proj/heads, softmax scale) into ONE lane-dense slab
    slab = pack_params(params)

    x1, x2, w = mlp_forward(x, task_feats, slab, out_dim1=out_dim1, out_dim2=out_dim2)
    jax.block_until_ready((x1, x2, w))

    # correctness check against a pure-JAX reference (unfolded math)
    rx1, rx2, rw = _pure_jax_reference(x, task_feats, params)
    assert jnp.allclose(x1, rx1, atol=1e-5), "x1 mismatch"
    assert jnp.allclose(x2, rx2, atol=1e-5), "x2 mismatch"
    assert jnp.allclose(w, rw, atol=1e-5), "attn weights mismatch"
    assert x1.shape == (out_dim1,) and x2.shape == (out_dim2,) and w.shape == (1, num_tasks)

    print("KERNEL_OK")
</pallas_src>

<mosaic_0001>
module attributes {stable_mosaic.version = 11 : i64} {
  func.func @_mlp_attn_kernel(%arg0: memref<1x32xf32, #tpu.memory_space<vmem>>, %arg1: memref<8x32xf32, #tpu.memory_space<vmem>>, %arg2: memref<40x128xf32, #tpu.memory_space<vmem>>, %arg3: memref<1x128xf32, #tpu.memory_space<vmem>>) attributes {dimension_semantics = [], scalar_prefetch = 0 : i64, scratch_operands = 0 : i64, tpu.core_type = #tpu.core_type<tc>} {
    %c0 = arith.constant 0 : index
    %c0_0 = arith.constant 0 : index
    %0 = vector.load %arg0[%c0, %c0_0] : memref<1x32xf32, #tpu.memory_space<vmem>>, vector<1x32xf32>
    %c0_1 = arith.constant 0 : index
    %c0_2 = arith.constant 0 : index
    %1 = vector.load %arg1[%c0_1, %c0_2] : memref<8x32xf32, #tpu.memory_space<vmem>>, vector<8x32xf32>
    %c0_3 = arith.constant 0 : index
    %c0_4 = arith.constant 0 : index
    %2 = vector.load %arg2[%c0_3, %c0_4] : memref<40x128xf32, #tpu.memory_space<vmem>>, vector<32x32xf32>
    %c32 = arith.constant 32 : index
    %c0_5 = arith.constant 0 : index
    %3 = vector.load %arg2[%c32, %c0_5] : memref<40x128xf32, #tpu.memory_space<vmem>>, vector<1x32xf32>
    %c0_6 = arith.constant 0 : index
    %c32_7 = arith.constant 32 : index
    %4 = vector.load %arg2[%c0_6, %c32_7] : memref<40x128xf32, #tpu.memory_space<vmem>>, vector<32x24xf32>
    %c32_8 = arith.constant 32 : index
    %c32_9 = arith.constant 32 : index
    %5 = vector.load %arg2[%c32_8, %c32_9] : memref<40x128xf32, #tpu.memory_space<vmem>>, vector<1x24xf32>
    %cst = arith.constant dense<0.000000e+00> : vector<1x32xf32>
    %6 = tpu.matmul %0, %2, %cst {dimension_numbers = #tpu.dot_dimension_numbers<[1], [0], [0], [1], [0, 0, 1, 1], [], []>} : vector<1x32xf32>, vector<32x32xf32>, vector<1x32xf32> -> vector<1x32xf32>
    %7 = arith.addf %6, %3 : vector<1x32xf32>
    %cst_10 = arith.constant dense<0.000000e+00> : vector<1x8xf32>
    %8 = tpu.matmul %7, %1, %cst_10 {dimension_numbers = #tpu.dot_dimension_numbers<[1], [1], [0], [0], [0, 0, 1, 0], [], []>} : vector<1x32xf32>, vector<8x32xf32>, vector<1x8xf32> -> vector<1x8xf32>
    %cst_11 = arith.constant dense<0xFF800000> : vector<1xf32>
    %9 = vector.multi_reduction <maximumf>, %8, %cst_11 [1] : vector<1x8xf32> to vector<1xf32>
    %10 = vector.shape_cast %9 : vector<1xf32> to vector<1x1xf32>
    %11 = vector.broadcast %10 : vector<1x1xf32> to vector<1x8xf32>
    %12 = arith.subf %8, %11 : vector<1x8xf32>
    %13 = math.exp %12 : vector<1x8xf32>
    %cst_12 = arith.constant dense<0.000000e+00> : vector<1xf32>
    %14 = vector.multi_reduction <add>, %13, %cst_12 [1] : vector<1x8xf32> to vector<1xf32>
    %15 = vector.shape_cast %14 : vector<1xf32> to vector<1x1xf32>
    %16 = tpu.reciprocal %15 : vector<1x1xf32> -> vector<1x1xf32>
    %17 = vector.broadcast %16 : vector<1x1xf32> to vector<1x8xf32>
    %18 = arith.mulf %13, %17 : vector<1x8xf32>
    %cst_13 = arith.constant dense<0.000000e+00> : vector<1x32xf32>
    %19 = tpu.matmul %18, %1, %cst_13 {dimension_numbers = #tpu.dot_dimension_numbers<[1], [0], [0], [1], [0, 0, 1, 1], [], []>} : vector<1x8xf32>, vector<8x32xf32>, vector<1x32xf32> -> vector<1x32xf32>
    %cst_14 = arith.constant dense<0.000000e+00> : vector<1x24xf32>
    %20 = tpu.matmul %19, %4, %cst_14 {dimension_numbers = #tpu.dot_dimension_numbers<[1], [0], [0], [1], [0, 0, 1, 1], [], []>} : vector<1x32xf32>, vector<32x24xf32>, vector<1x24xf32> -> vector<1x24xf32>
    %21 = arith.addf %20, %5 : vector<1x24xf32>
    %22 = arith.negf %21 : vector<1x24xf32>
    %23 = math.exp %22 : vector<1x24xf32>
    %cst_15 = arith.constant 1.000000e+00 : f32
    %24 = vector.broadcast %cst_15 : f32 to vector<1x24xf32>
    %25 = arith.addf %24, %23 : vector<1x24xf32>
    %26 = arith.divf %24, %25 : vector<1x24xf32>
    %cst_16 = arith.constant 0.000000e+00 : f32
    %27 = vector.broadcast %cst_16 : f32 to vector<1x96xf32>
    %28 = tpu.concatenate %26, %18, %27 in 1 : vector<1x24xf32>, vector<1x8xf32>, vector<1x96xf32> -> vector<1x128xf32>
    %c0_17 = arith.constant 0 : index
    %c0_18 = arith.constant 0 : index
    %29 = vector.load %arg3[%c0_17, %c0_18] : memref<1x128xf32, #tpu.memory_space<vmem>>, vector<1x128xf32>
    tpu.vector_store %arg3[%c0_17, %c0_18], %28 {strides = array<i32>} : memref<1x128xf32, #tpu.memory_space<vmem>>, vector<1x128xf32>,
    return
  }
}

</mosaic_0001>

<bundles_post_ra>
// kernel: mlp_forward.1
= control target key start
LH: loop header
LB: loop body
LE: loop exit
PB: predicated region body
PF: predicated region fallthrough
CT: control target
= control target key end

     0   :  { %8 = vsyncpa [#allocation3], 0  ;;  %s350_s0 = inlined_call_operand.vmem [shape: f32[1,32], index: 0, kind: input, shape index: {}]   ;;  %s351_s1 = inlined_call_operand.hbm [shape: f32[8,32], index: 1, kind: input, shape index: {}]   ;;  %s352_s2 = inlined_call_operand.hbm [shape: f32[40,128], index: 2, kind: input, shape index: {}]   ;;  %s353_s3 = inlined_call_operand.vmem [shape: f32[1,128], index: 3, kind: output, shape index: {}]  }
   0x1   :  { %s17_s14 = sshll.u32 %s351_s1, 4  ;;  %s18_s14 = int_to_ptr.hbm [resolvable:$true] %s17_s14 }
   0x2   :  { %9 = vsyncpa [#allocation5], 0  ;;  %s307_s15 = smov [#allocation2]   ;;  %s27_s19 = sshll.u32 %s352_s2, 4  ;;  %s28_s19 = int_to_ptr.hbm [resolvable:$true] %s27_s19 }
   0x3   :  { %s19_s16 = sshll.u32 %s307_s15, 4  ;;  %s308_s20 = smov [#allocation4]   ;;  %s20_s16 = int_to_ptr.vmem [resolvable:$true] %s19_s16 }
   0x4   :  { %22 = dma.hbm_to_vmem [thread:$0]  %s18_s14, 128, %s20_s16, [#allocation3]  }
   0x5   :  { %s29_s21 = sshll.u32 %s308_s20, 4  ;;  %s309_s22 = smov 128   ;;  %s30_s21 = int_to_ptr.vmem [resolvable:$true] %s29_s21 }
   0x6   :  { %s310_s23 = smov 8  }
   0x7   :  { %35 = dma.hbm_to_vmem [thread:$0]  %s28_s19, 640, %s30_s21, [#allocation5], %s309_s22, %s309_s22, %s310_s23  }
   0x8   :  { %303 = dma.done.wait [#allocation3], 128  }
   0x9   :  { %304 = vsyncadd [#allocation3], 4294967168 }
   0xa   :  { %305 = dma.done.wait [#allocation5], 640  }
   0xb   :  { %306 = vsyncadd [#allocation5], 4294966656  ;;  %v49_v0 = vld [vmem:[#allocation4 + $0x18] sm:$0xff]  ;;  %v48_v1 = vld [vmem:[#allocation4 + $0x10] sm:$0xff]  ;;  %vm51_vm0 = vcmask 261120   ;;  %vm101_vm1 = vcmask 57344  }
   0xc   :  { %67 = vmatpush.msra.mxu0 %v49_v0  ;;  %v47_v2 = vld [vmem:[#allocation4 + $0x8] sm:$0xff]  ;;  %v46_v3 = vld [vmem:[#allocation4] sm:$0xff]  ;;  %v44_v5 = vld [vmem:[%s350_s0] sm:$0x1]  ;;  %s311_s0 = smov 96   ;;  %v237_v17 = vpack.i.bf16 %v48_v1, %v49_v0  ;;  %vm126_vm6 = vcmask 64512  }
   0xd   :  { %v242_v4 = vpack.i.bf16 %v46_v3, %v47_v2  ;;  %v45_v6 = vld [vmem:[#allocation2] sm:$0xff]  ;;  %v50_v7 = vld [vmem:[#allocation4 + $0x20] sm:$0x1]  ;;  %s312_s24 = smov 24   ;;  %vm215_vm10 = vcmask 195584  }
   0xe   :  { %68 = vmatpush.msra.mxu0 %v48_v1  ;;  %226 = vmatpush.xpose.msk.msra.mxu1 %vm51_vm0, %v45_v6 }
   0xf   :  { %145 = vmatpush.msra.mxu2 %v45_v6  ;;  %167 = vrot.lane.b32.xlu2 %v50_v7, %s311_s0 }
  0x10   :  { %69 = vmatpush.msra.mxu0 %v47_v2  ;;  %238 = vrot.lane.b32.xlu1 %v237_v17, %s311_s0 }
  0x12   :  { %70 = vmatpush.msra.mxu0 %v46_v3 }
  0x13   :  { %225 = vmatmul.msk.f32.vlgmr.msra.gmra.mxu0 %vm51_vm0, %v44_v5 }
  0x18   :  { %243 = vrot.lane.b32.xlu1 %v242_v4, %s311_s0 }
  0x69   :  { %v168_v37 = vpop.permute.xlu2 %167 }
  0x82   :  { %v239_v30 = vpop.permute.xlu1 %238 }
  0x83   :  { %v240_v31 = vunpack.i.l.bf16 %v239_v30  ;;  %v241_v32 = vunpack.i.h.bf16 %v239_v30 }
  0x85   :  { %185 = vmatpush.msra.mxu3 %v240_v31 }
  0x87   :  { %186 = vmatpush.msra.mxu3 %v241_v32 }
  0x8a   :  { %v244_v33 = vpop.permute.xlu1 %243 }
  0x8b   :  { %v246_v34 = vunpack.i.h.bf16 %v244_v33  ;;  %v245_v35 = vunpack.i.l.bf16 %v244_v33 }
  0x8d   :  { %187 = vmatpush.msra.mxu3 %v245_v35 }
  0x8f   :  { %188 = vmatpush.msra.mxu3 %v246_v34 }
  0x90   :  { %v72_v8 = vpop.f32.mrf.mxu0 }
  0x91   :  { %v73_v9 = vadd.f32 %v72_v8, %v50_v7 }
  0x93   :  { %227 = vmatmul.msk.f32.vlgmr.msra.gmra.mxu1 %vm51_vm0, %v73_v9 }
 0x110   :  { %v98_v10 = vpop.f32.mrf.mxu1 }
 0x111   :  { %v102_v11 = vsel %vm101_vm1, %v98_v10, -inf }
 0x112   :  { %103 = vmax.xlane.f32.xlu0 %v102_v11 }
 0x185   :  { %v104_v12 = vpop.xlane.xlu0 %103 }
 0x186   :  { %v105_v13 = vsub.f32 %v98_v10, %v104_v12 }
 0x188   :  { %v106_v14 = vmul.f32 1.442695, %v105_v13 }
 0x18a   :  { %247 = vpow2.f32 %v106_v14 }
 0x190   :  { %v248_v15 = vpop.eup %247 }
 0x191   :  { %v108_v16 = vsel %vm101_vm1, %v248_v15, 0.0 }
 0x192   :  { %109 = vadd.xlane.f32.xlu0 %v108_v16 }
 0x205   :  { %v110_v18 = vpop.xlane.xlu0 %109 }
 0x206   :  { %249 = vrcp.f32 %v110_v18  ;;  %v122_v22 = vand.u32 2147483648, %v110_v18  ;;  %v120_v24 = vand.u32 2147483647, %v110_v18  ;;  %vm116_vm3 = vweird.f32 %v110_v18 }
 0x208   :  { %v123_v26 = vor.u32 1.1754944e-38, %v122_v22  ;;  %vm121_vm5 = vcmp.eq.f32.partialorder %v120_v24, 8.507059e+37 }
 0x20c   :  { %v250_v19 = vpop.eup %249 }
 0x20d   :  { %v112_v20 = vmul.f32 %v250_v19, %v110_v18  ;;  %vm117_vm2 = vweird.f32 %v250_v19 }
 0x20e   :  { %vm118_vm4 = vmor %vm116_vm3, %vm117_vm2 }
 0x20f   :  { %v113_v21 = vsub.f32 1.0, %v112_v20 }
 0x211   :  { %v114_v23 = vmul.f32 %v250_v19, %v113_v21 }
 0x213   :  { %v115_v25 = vadd.f32 %v250_v19, %v114_v23 }
 0x215   :  { %v119_v27 = vsel %vm118_vm4, %v250_v19, %v115_v25 }
 0x216   :  { %v124_v28 = vsel %vm121_vm5, %v123_v26, %v119_v27 }
 0x217   :  { %v125_v29 = vmul.f32 %v248_v15, %v124_v28 }
 0x219   :  { %212 = vrot.lane.b32.xlu2 %v125_v29, %s312_s24  ;;  %228 = vmatmul.msk.f32.vlgmr.msra.gmra.mxu2 %vm126_vm6, %v125_v29 }
 0x273   :  { %v213_v52 = vpop.permute.xlu2 %212 }
 0x29c   :  { %v147_v36 = vpop.f32.mrf.mxu2 }
 0x29d   :  { %229 = vmatmul.msk.f32.vlgmr.msra.gmra.mxu3 %vm51_vm0, %v147_v36 }
 0x320   :  { %v190_v38 = vpop.f32.mrf.mxu3 }
 0x321   :  { %v191_v39 = vadd.f32 %v190_v38, %v168_v37 }
 0x323   :  { %v230_v40 = vmul.f32 -1.442695, %v191_v39 }
 0x325   :  { %251 = vpow2.f32 %v230_v40 }
 0x32b   :  { %v252_v41 = vpop.eup %251 }
 0x32c   :  { %v196_v42 = vadd.f32 1.0, %v252_v41 }
 0x32e   :  { %253 = vrcp.f32 %v196_v42  ;;  %v208_v46 = vand.u32 2147483648, %v196_v42  ;;  %v206_v48 = vand.u32 2147483647, %v196_v42  ;;  %vm202_vm8 = vweird.f32 %v196_v42 }
 0x330   :  { %v209_v50 = vor.u32 1.1754944e-38, %v208_v46  ;;  %vm207_vm11 = vcmp.eq.f32.partialorder %v206_v48, 8.507059e+37 }
 0x334   :  { %v254_v43 = vpop.eup %253 }
 0x335   :  { %v198_v44 = vmul.f32 %v254_v43, %v196_v42  ;;  %vm203_vm7 = vweird.f32 %v254_v43 }
 0x336   :  { %vm204_vm9 = vmor %vm202_vm8, %vm203_vm7 }
 0x337   :  { %v199_v45 = vsub.f32 1.0, %v198_v44 }
 0x339   :  { %v200_v47 = vmul.f32 %v254_v43, %v199_v45 }
 0x33b   :  { %v201_v49 = vadd.f32 %v254_v43, %v200_v47 }
 0x33d   :  { %v205_v51 = vsel %vm204_vm9, %v254_v43, %v201_v49 }
 0x33e   :  { %v210_v53 = vsel %vm207_vm11, %v209_v50, %v205_v51 }
 0x33f   :  { %v216_v54 = vsel %vm215_vm10, %v210_v53, %v213_v52 }
 0x340   :  { %v217_v55 = vsel %vm51_vm0, %v216_v54, 0.0 }
 0x341   :  { %218 = vst [vmem:[%s353_s3] sm:$0x1] %v217_v55 }
 0x342   :  { %223 = vsyncpa [#allocation3], 1 }
 0x343   :  { %224 = vsyncpa [#allocation5], 1 }

</bundles_post_ra>
